<compile_context>
chip_gen: v7x
topology: tpu7x:2x2x1
jax: 0.10.0
libtpu: 0.0.40
codegen_flags: <defaults>
</compile_context>

<pallas_src>
import functools

import jax
import jax.numpy as jnp
from jax.experimental import pallas as pl
from jax.experimental.pallas import tpu as pltpu


def _round_up(x, m):
    return ((x + m - 1) // m) * m


def _dueling_net_kernel(x_ref, w_ref, b_ref, out_ref, *, n_hidden_layers, k0):
    """Pure matmul+relu chain; the dueling combine is pre-folded into layer L-1.

    x_ref  : [block_b, k0]   activations (k0 = 8-aligned real input width)
    w_ref  : [L, P, P]       packed weights (matmul dtype; zero padded)
    b_ref  : [L, P]          packed biases  (f32; zero padded)
    out_ref: [block_b, P]    f32; columns [n_out, P) are exactly zero
    """
    mm_dtype = w_ref.dtype

    # Layer 0: contract only over the real (8-aligned) input width.
    h = jnp.maximum(
        jnp.dot(
            x_ref[...].astype(mm_dtype),
            w_ref[0, :k0, :],
            preferred_element_type=jnp.float32,
        )
        + b_ref[0:1, :],
        0.0,
    )

    # Remaining hidden relu layers (static unroll over a handful of layers).
    for i in range(1, n_hidden_layers):
        h = jnp.maximum(
            jnp.dot(h.astype(mm_dtype), w_ref[i], preferred_element_type=jnp.float32)
            + b_ref[i : i + 1, :],
            0.0,
        )

    # Head: val + adv - mean(adv) is folded into the packed weights, so this is
    # just one more matmul + bias, written straight to the lane-dense output.
    hl = n_hidden_layers
    out_ref[...] = (
        jnp.dot(h.astype(mm_dtype), w_ref[hl], preferred_element_type=jnp.float32)
        + b_ref[hl : hl + 1, :]
    )


def _pack_params(params, P, weight_dtype):
    """Pack all layer weights/biases into lane-padded slabs.

    The dueling combine is a linear map on [adv (n_out cols) | val (1 col)]:
        out = val + adv - mean(adv)  ==  [adv | val] @ T
    with T[j, j] += 1, T[k, j] -= 1/n_out, T[n_out, j] = 1.  We fold T into the
    fused head weight/bias so the kernel's last layer directly produces `out`.

    Returns:
      w_slab: [L, P, P] (weight_dtype)  zero-padded [in, out] weights
      b_slab: [L, P]    (f32)           zero-padded biases
    """
    n_out = params["wadv"].shape[1]
    T = jnp.concatenate(
        [
            jnp.eye(n_out, dtype=jnp.float32)
            - jnp.full((n_out, n_out), 1.0 / n_out, jnp.float32),
            jnp.ones((1, n_out), jnp.float32),
        ],
        axis=0,
    )
    w_head = jnp.concatenate([params["wadv"], params["wv"]], axis=1) @ T
    b_head = jnp.concatenate([params["badv"], params["bv"]], axis=1) @ T

    layer_ws = [params["w1"], params["w2"], params["w3"], params["w4"], w_head]
    layer_bs = [params["b1"], params["b2"], params["b3"], params["b4"], b_head]

    L = len(layer_ws)
    w_slab = jnp.zeros((L, P, P), jnp.float32)
    b_slab = jnp.zeros((L, P), jnp.float32)
    for i, (w, b) in enumerate(zip(layer_ws, layer_bs)):
        w_slab = w_slab.at[i, : w.shape[0], : w.shape[1]].set(w)
        b_slab = b_slab.at[i, : b.shape[1]].set(b[0])
    return w_slab.astype(weight_dtype), b_slab


def dueling_net_forward(x, params, *, max_block_b=512, weight_dtype=jnp.float32):
    """x: [B, n_in]; params: dict of weights/biases (see init_params).

    max_block_b: max batch rows per grid step (VMEM per step stays ~1-2 MB even
      at 512; compiler splits rows for the MXU, so geometry doesn't constrain it).
    weight_dtype: jnp.float32 or jnp.bfloat16 (bf16 matmul operands, f32
      accumulation) — use bf16 on v6e/v7x for native MXU throughput.
    """
    B, n_in = x.shape
    n_out = params["wadv"].shape[1]

    k0 = _round_up(n_in, 8)  # 8-aligned real input width
    widths = [
        k0,
        params["w1"].shape[1],
        params["w2"].shape[1],
        params["w3"].shape[1],
        params["w4"].shape[1],
        n_out,
    ]
    P = _round_up(max(128, max(widths)), 128)  # common lane-padded feature width

    w_slab, b_slab = _pack_params(params, P, weight_dtype)
    L = w_slab.shape[0]

    # Batch tiling: sublane-aligned tiles, and aim for >= 2 grid steps whenever
    # B > 8 so the "parallel" batch axis can shard across both v7x TensorCores.
    max_block_b = max(8, _round_up(max_block_b, 8))
    B8 = _round_up(B, 8)
    block_b = min(max_block_b, max(8, _round_up(pl.cdiv(B8, 2), 8)))
    B_pad = _round_up(B, block_b)

    # Pad only the batch axis (plus a tiny 8-alignment of the feature axis if
    # needed); no lane-padding of x to P on the host.
    x_in = x.astype(weight_dtype)
    if B_pad != B or k0 != n_in:
        x_in = jnp.pad(x_in, ((0, B_pad - B), (0, k0 - n_in)))

    grid = (B_pad // block_b,)
    kernel = functools.partial(_dueling_net_kernel, n_hidden_layers=L - 1, k0=k0)

    out_pad = pl.pallas_call(
        kernel,
        out_shape=jax.ShapeDtypeStruct((B_pad, P), jnp.float32),
        grid_spec=pltpu.PrefetchScalarGridSpec(
            num_scalar_prefetch=0,
            grid=grid,
            in_specs=[
                # x tile walks the batch axis; last dim == full array dim.
                pl.BlockSpec((block_b, k0), lambda i: (i, 0)),
                # Weight / bias slabs: same block every step -> stay resident.
                pl.BlockSpec((L, P, P), lambda i: (0, 0, 0)),
                pl.BlockSpec((L, P), lambda i: (0, 0)),
            ],
            out_specs=pl.BlockSpec((block_b, P), lambda i: (i, 0)),
        ),
        compiler_params=pltpu.CompilerParams(
            dimension_semantics=("parallel",),  # shard batch over v7x's 2 TCs
        ),
    )(x_in, w_slab, b_slab)

    return out_pad[:B, :n_out]


def init_params(key, n_in, n_mid1, n_mid2, n_mid3, n_mid4, n_out):
    """Deterministic synthetic init (PyTorch-style uniform fan-in bounds)."""
    dims = [
        ("w1", "b1", n_in, n_mid1),
        ("w2", "b2", n_mid1, n_mid2),
        ("w3", "b3", n_mid2, n_mid3),
        ("w4", "b4", n_mid3, n_mid4),
        ("wadv", "badv", n_mid4, n_out),
        ("wv", "bv", n_mid4, 1),
    ]
    params = {}
    for wname, bname, fan_in, fan_out in dims:
        key, kw, kb = jax.random.split(key, 3)
        bound = 1.0 / jnp.sqrt(jnp.float32(fan_in))
        # Stored as [in, out] so the kernel does x @ W.
        params[wname] = jax.random.uniform(
            kw, (fan_in, fan_out), jnp.float32, -bound, bound
        )
        params[bname] = jax.random.uniform(
            kb, (1, fan_out), jnp.float32, -bound, bound
        )
    return params


def reference_forward(x, params):
    """Pure-JAX reference for correctness check."""
    h = x
    for w, b in (("w1", "b1"), ("w2", "b2"), ("w3", "b3"), ("w4", "b4")):
        h = jnp.maximum(h @ params[w] + params[b], 0.0)
    adv = h @ params["wadv"] + params["badv"]
    val = h @ params["wv"] + params["bv"]
    return val + adv - jnp.mean(adv, axis=1, keepdims=True)


if __name__ == "__main__":
    key = jax.random.PRNGKey(0)

    # Small shapes consistent with the module's forward.
    B, n_in, n_mid1, n_mid2, n_mid3, n_mid4, n_out = 8, 32, 64, 64, 32, 32, 4

    key, kx, kp = jax.random.split(key, 3)
    x = jax.random.normal(kx, (B, n_in), jnp.float32)
    params = init_params(kp, n_in, n_mid1, n_mid2, n_mid3, n_mid4, n_out)

    # f32 path (tight tolerance).
    out = jax.block_until_ready(dueling_net_forward(x, params))
    ref = reference_forward(x, params)
    assert out.shape == (B, n_out)
    assert jnp.allclose(out, ref, atol=1e-4, rtol=1e-4), "f32 mismatch vs reference"

    # bf16 matmul path (v6e/v7x-friendly), multi-step grid (B=24 -> grid=(2,)).
    key, kx2 = jax.random.split(key)
    x2 = jax.random.normal(kx2, (24, n_in), jnp.float32)
    out2 = jax.block_until_ready(
        dueling_net_forward(x2, params, weight_dtype=jnp.bfloat16)
    )
    ref2 = reference_forward(x2, params)
    assert out2.shape == (24, n_out)
    assert jnp.allclose(out2, ref2, atol=1e-1, rtol=1e-1), "bf16 mismatch vs reference"

    print("KERNEL_OK")
</pallas_src>

<mosaic_0001>
module attributes {stable_mosaic.version = 11 : i64} {
  func.func @_dueling_net_kernel(%arg0: i32, %arg1: memref<8x32xf32, #tpu.memory_space<vmem>>, %arg2: memref<5x128x128xf32, #tpu.memory_space<vmem>>, %arg3: memref<5x128xf32, #tpu.memory_space<vmem>>, %arg4: memref<8x128xf32, #tpu.memory_space<vmem>>) attributes {dimension_semantics = [#tpu.dimension_semantics<parallel>], iteration_bounds = array<i64: 1>, scalar_prefetch = 0 : i64, scratch_operands = 0 : i64, tpu.core_type = #tpu.core_type<tc>, window_params = [{transform_indices = @transform_0, window_bounds = array<i64: 8, 32>}, {pipeline_mode = #tpu.pipeline_mode<synchronous>, transform_indices = @transform_1, window_bounds = array<i64: 5, 128, 128>}, {pipeline_mode = #tpu.pipeline_mode<synchronous>, transform_indices = @transform_2, window_bounds = array<i64: 5, 128>}, {transform_indices = @transform_3, window_bounds = array<i64: 8, 128>}]} {
    %c0 = arith.constant 0 : index
    %c0_0 = arith.constant 0 : index
    %0 = vector.load %arg1[%c0, %c0_0] : memref<8x32xf32, #tpu.memory_space<vmem>>, vector<8x32xf32>
    %c0_1 = arith.constant 0 : index
    %c0_2 = arith.constant 0 : index
    %c0_3 = arith.constant 0 : index
    %1 = vector.load %arg2[%c0_1, %c0_2, %c0_3] : memref<5x128x128xf32, #tpu.memory_space<vmem>>, vector<1x32x128xf32>
    %2 = vector.shape_cast %1 : vector<1x32x128xf32> to vector<32x128xf32>
    %cst = arith.constant dense<0.000000e+00> : vector<8x128xf32>
    %3 = tpu.matmul %0, %2, %cst {dimension_numbers = #tpu.dot_dimension_numbers<[1], [0], [0], [1], [0, 0, 1, 1], [], []>} : vector<8x32xf32>, vector<32x128xf32>, vector<8x128xf32> -> vector<8x128xf32>
    %c0_4 = arith.constant 0 : index
    %c0_5 = arith.constant 0 : index
    %4 = vector.load %arg3[%c0_4, %c0_5] : memref<5x128xf32, #tpu.memory_space<vmem>>, vector<1x128xf32>
    %5 = vector.broadcast %4 : vector<1x128xf32> to vector<8x128xf32>
    %6 = arith.addf %3, %5 : vector<8x128xf32>
    %cst_6 = arith.constant 0.000000e+00 : f32
    %7 = vector.broadcast %cst_6 : f32 to vector<8x128xf32>
    %8 = arith.maximumf %6, %7 : vector<8x128xf32>
    %c1 = arith.constant 1 : index
    %c0_7 = arith.constant 0 : index
    %c0_8 = arith.constant 0 : index
    %9 = vector.load %arg2[%c1, %c0_7, %c0_8] : memref<5x128x128xf32, #tpu.memory_space<vmem>>, vector<1x128x128xf32>
    %10 = vector.shape_cast %9 : vector<1x128x128xf32> to vector<128x128xf32>
    %cst_9 = arith.constant dense<0.000000e+00> : vector<8x128xf32>
    %11 = tpu.matmul %8, %10, %cst_9 {dimension_numbers = #tpu.dot_dimension_numbers<[1], [0], [0], [1], [0, 0, 1, 1], [], []>} : vector<8x128xf32>, vector<128x128xf32>, vector<8x128xf32> -> vector<8x128xf32>
    %c1_10 = arith.constant 1 : index
    %c0_11 = arith.constant 0 : index
    %12 = vector.load %arg3[%c1_10, %c0_11] : memref<5x128xf32, #tpu.memory_space<vmem>>, vector<1x128xf32>
    %13 = vector.broadcast %12 : vector<1x128xf32> to vector<8x128xf32>
    %14 = arith.addf %11, %13 : vector<8x128xf32>
    %cst_12 = arith.constant 0.000000e+00 : f32
    %15 = vector.broadcast %cst_12 : f32 to vector<8x128xf32>
    %16 = arith.maximumf %14, %15 : vector<8x128xf32>
    %c2 = arith.constant 2 : index
    %c0_13 = arith.constant 0 : index
    %c0_14 = arith.constant 0 : index
    %17 = vector.load %arg2[%c2, %c0_13, %c0_14] : memref<5x128x128xf32, #tpu.memory_space<vmem>>, vector<1x128x128xf32>
    %18 = vector.shape_cast %17 : vector<1x128x128xf32> to vector<128x128xf32>
    %cst_15 = arith.constant dense<0.000000e+00> : vector<8x128xf32>
    %19 = tpu.matmul %16, %18, %cst_15 {dimension_numbers = #tpu.dot_dimension_numbers<[1], [0], [0], [1], [0, 0, 1, 1], [], []>} : vector<8x128xf32>, vector<128x128xf32>, vector<8x128xf32> -> vector<8x128xf32>
    %c2_16 = arith.constant 2 : index
    %c0_17 = arith.constant 0 : index
    %20 = vector.load %arg3[%c2_16, %c0_17] : memref<5x128xf32, #tpu.memory_space<vmem>>, vector<1x128xf32>
    %21 = vector.broadcast %20 : vector<1x128xf32> to vector<8x128xf32>
    %22 = arith.addf %19, %21 : vector<8x128xf32>
    %cst_18 = arith.constant 0.000000e+00 : f32
    %23 = vector.broadcast %cst_18 : f32 to vector<8x128xf32>
    %24 = arith.maximumf %22, %23 : vector<8x128xf32>
    %c3 = arith.constant 3 : index
    %c0_19 = arith.constant 0 : index
    %c0_20 = arith.constant 0 : index
    %25 = vector.load %arg2[%c3, %c0_19, %c0_20] : memref<5x128x128xf32, #tpu.memory_space<vmem>>, vector<1x128x128xf32>
    %26 = vector.shape_cast %25 : vector<1x128x128xf32> to vector<128x128xf32>
    %cst_21 = arith.constant dense<0.000000e+00> : vector<8x128xf32>
    %27 = tpu.matmul %24, %26, %cst_21 {dimension_numbers = #tpu.dot_dimension_numbers<[1], [0], [0], [1], [0, 0, 1, 1], [], []>} : vector<8x128xf32>, vector<128x128xf32>, vector<8x128xf32> -> vector<8x128xf32>
    %c3_22 = arith.constant 3 : index
    %c0_23 = arith.constant 0 : index
    %28 = vector.load %arg3[%c3_22, %c0_23] : memref<5x128xf32, #tpu.memory_space<vmem>>, vector<1x128xf32>
    %29 = vector.broadcast %28 : vector<1x128xf32> to vector<8x128xf32>
    %30 = arith.addf %27, %29 : vector<8x128xf32>
    %cst_24 = arith.constant 0.000000e+00 : f32
    %31 = vector.broadcast %cst_24 : f32 to vector<8x128xf32>
    %32 = arith.maximumf %30, %31 : vector<8x128xf32>
    %c4 = arith.constant 4 : index
    %c0_25 = arith.constant 0 : index
    %c0_26 = arith.constant 0 : index
    %33 = vector.load %arg2[%c4, %c0_25, %c0_26] : memref<5x128x128xf32, #tpu.memory_space<vmem>>, vector<1x128x128xf32>
    %34 = vector.shape_cast %33 : vector<1x128x128xf32> to vector<128x128xf32>
    %cst_27 = arith.constant dense<0.000000e+00> : vector<8x128xf32>
    %35 = tpu.matmul %32, %34, %cst_27 {dimension_numbers = #tpu.dot_dimension_numbers<[1], [0], [0], [1], [0, 0, 1, 1], [], []>} : vector<8x128xf32>, vector<128x128xf32>, vector<8x128xf32> -> vector<8x128xf32>
    %c4_28 = arith.constant 4 : index
    %c0_29 = arith.constant 0 : index
    %36 = vector.load %arg3[%c4_28, %c0_29] : memref<5x128xf32, #tpu.memory_space<vmem>>, vector<1x128xf32>
    %37 = vector.broadcast %36 : vector<1x128xf32> to vector<8x128xf32>
    %38 = arith.addf %35, %37 : vector<8x128xf32>
    %c0_30 = arith.constant 0 : index
    %c0_31 = arith.constant 0 : index
    %39 = vector.load %arg4[%c0_30, %c0_31] : memref<8x128xf32, #tpu.memory_space<vmem>>, vector<8x128xf32>
    tpu.vector_store %arg4[%c0_30, %c0_31], %38 {strides = array<i32>} : memref<8x128xf32, #tpu.memory_space<vmem>>, vector<8x128xf32>,
    return
  }
  func.func @transform_0(%arg0: i32) -> (i32, i32) {
    %c0_i32 = arith.constant 0 : i32
    %c0_i32_0 = arith.constant 0 : i32
    return %arg0, %c0_i32 : i32, i32
  }
  func.func @transform_1(%arg0: i32) -> (i32, i32, i32) {
    %c0_i32 = arith.constant 0 : i32
    %c0_i32_0 = arith.constant 0 : i32
    %c0_i32_1 = arith.constant 0 : i32
    %c0_i32_2 = arith.constant 0 : i32
    return %c0_i32, %c0_i32_0, %c0_i32_1 : i32, i32, i32
  }
  func.func @transform_2(%arg0: i32) -> (i32, i32) {
    %c0_i32 = arith.constant 0 : i32
    %c0_i32_0 = arith.constant 0 : i32
    %c0_i32_1 = arith.constant 0 : i32
    return %c0_i32, %c0_i32_0 : i32, i32
  }
  func.func @transform_3(%arg0: i32) -> (i32, i32) {
    %c0_i32 = arith.constant 0 : i32
    %c0_i32_0 = arith.constant 0 : i32
    return %arg0, %c0_i32 : i32, i32
  }
}

</mosaic_0001>

<bundles_post_ra>
// kernel: tpu_custom_call.1
= control target key start
LH: loop header
LB: loop body
LE: loop exit
PB: predicated region body
PF: predicated region fallthrough
CT: control target
= control target key end

     0   :  { %8 = vsyncpa [#allocation3], 0  ;;  %s1081_s0 = inlined_call_operand.hbm [shape: f32[8,32], index: 0, kind: input, shape index: {}]   ;;  %s1082_s1 = inlined_call_operand.hbm [shape: f32[5,128,128], index: 1, kind: input, shape index: {}]   ;;  %s1083_s2 = inlined_call_operand.hbm [shape: f32[5,128], index: 2, kind: input, shape index: {}]   ;;  %s1084_s3 = inlined_call_operand.hbm [shape: f32[8,128], index: 3, kind: output, shape index: {}]  }
   0x1   :  { %9 = vsyncpa [#allocation6], 0 }
   0x2   :  { %10 = vsyncpa [#allocation4], 0  ;;  %s960_s12 = smov [#allocation5]   ;;  %s866_s16 = scalar_lea.hbm %s1082_s1, 10240 }
   0x3   :  { %s26_s13 = sshll.u32 %s960_s12, 4  ;;  %p867_p0 = scmp.ne.s32.totalorder %s1082_s1, %s866_s16  ;;  %s27_s13 = int_to_ptr.vmem [resolvable:$true] %s26_s13 }
   0x4   :  { %p870_p1 = scmp.lt.u32.totalorder %s866_s16, %s1082_s1 }
   0x6   :  { %p872_p2 = pnand %p870_p1, %p867_p0 }
   0x8   :  { %875 = shalt.err (!%p872_p2)
}
   0x9   :  { %s876_s21 = scalar_lea.vmem %s27_s13, 10240  ;;  %p881_p4 = scmp.lt.s32.totalorder %s27_s13, %s27_s13 }
   0xa   :  { %p877_p3 = scmp.ne.s32.totalorder %s27_s13, %s876_s21  ;;  %p882_p5 = scmp.lt.s32.totalorder %s876_s21, %s876_s21 }
   0xc   :  { %p883_p6 = por %p882_p5, %p881_p4 }
   0xe   :  { %p884_p7 = pnand %p883_p6, %p877_p3 }
  0x10   :  { %887 = shalt.err (!%p884_p7)
}
  0x11   :  { %s961_s22 = smov 128   ;;  %s962_s23 = smov 8  }
  0x12   :  { %32 = dma.hbm_to_vmem [thread:$0]  %s1082_s1, 10240, %s27_s13, [#allocation6], %s961_s22, %s961_s22, %s962_s23  }
  0x13   :  { %s963_s26 = smov [#allocation2]   ;;  %s964_s28 = smov [#allocation7]  }
  0x14   :  { %s17_s27 = sshll.u32 %s963_s26, 4  ;;  %s39_s29 = sshll.u32 %s964_s28, 4  ;;  %s18_s27 = int_to_ptr.vmem [resolvable:$true] %s17_s27  ;;  %s40_s29 = int_to_ptr.vmem [resolvable:$true] %s39_s29 }
  0x15   :  { %s888_s5 = scalar_lea.hbm %s1081_s0, 128 }
  0x16   :  { %p889_p8 = scmp.ne.s32.totalorder %s1081_s0, %s888_s5  ;;  %p892_p9 = scmp.lt.u32.totalorder %s888_s5, %s1081_s0 }
  0x18   :  { %p894_p10 = pnand %p892_p9, %p889_p8 }
  0x1a   :  { %897 = shalt.err (!%p894_p10)
}
  0x1b   :  { %s898_s1 = scalar_lea.vmem %s18_s27, 128  ;;  %p903_p12 = scmp.lt.s32.totalorder %s18_s27, %s18_s27 }
  0x1c   :  { %p899_p11 = scmp.ne.s32.totalorder %s18_s27, %s898_s1  ;;  %p904_p13 = scmp.lt.s32.totalorder %s898_s1, %s898_s1 }
  0x1e   :  { %p905_p0 = por %p904_p13, %p903_p12 }
  0x20   :  { %p906_p1 = pnand %p905_p0, %p899_p11 }
  0x22   :  { %909 = shalt.err (!%p906_p1)
}
  0x23   :  { %20 = dma.hbm_to_vmem [thread:$0]  %s1081_s0, 128, %s18_s27, [#allocation3]  }
  0x24   :  { %s910_s14 = scalar_lea.hbm %s1083_s2, 128 }
  0x25   :  { %p911_p2 = scmp.ne.s32.totalorder %s1083_s2, %s910_s14  ;;  %p914_p3 = scmp.lt.u32.totalorder %s910_s14, %s1083_s2 }
  0x27   :  { %p916_p4 = pnand %p914_p3, %p911_p2 }
  0x29   :  { %919 = shalt.err (!%p916_p4)
}
  0x2a   :  { %s920_s19 = scalar_lea.vmem %s40_s29, 128  ;;  %p925_p6 = scmp.lt.s32.totalorder %s40_s29, %s40_s29 }
  0x2b   :  { %p921_p5 = scmp.ne.s32.totalorder %s40_s29, %s920_s19  ;;  %p926_p7 = scmp.lt.s32.totalorder %s920_s19, %s920_s19 }
  0x2d   :  { %p927_p8 = por %p926_p7, %p925_p6 }
  0x2f   :  { %p928_p9 = pnand %p927_p8, %p921_p5 }
  0x31   :  { %931 = shalt.err (!%p928_p9)
}
  0x32   :  { %42 = dma.hbm_to_vmem [thread:$0]  %s1083_s2, 128, %s40_s29, [#allocation6]  }
  0x33   :  { %954 = dma.done.wait [#allocation3], 128  }
  0x34   :  { %955 = vsyncadd [#allocation3], 4294967168 }
  0x35   :  { %956 = dma.done.wait [#allocation6], 10368  }
  0x36   :  { %957 = vsyncadd [#allocation6], 4294956928  ;;  %v965_v0 = vmov 0.0|0.0   ;;  %vm966_vm0 = vmmov 0   ;;  %v967_v1 = vmov 0.0   ;;  %v53_v2 = vld [vmem:[#allocation5] sm:$0xff] }
  0x37   :  { %755 = vmatprep.subr.bf16.mxu0 %v965_v0  ;;  %612 = vmatprep.mubr.msk.f32.mxu0 %vm966_vm0, %v967_v1  ;;  %v54_v3 = vld [vmem:[#allocation5 + $0x8] sm:$0xff]  ;;  %v55_v4 = vld [vmem:[#allocation5 + $0x10] sm:$0xff]  ;;  %v56_v6 = vld [vmem:[#allocation5 + $0x18] sm:$0xff]  ;;  %vm62_vm1 = vcmask 261120   ;;  %s968_s2 = smov [#allocation8]  }
  0x38   :  { %761 = vmatprep.subr.bf16.mxu1 %v965_v0  ;;  %647 = vmatprep.mubr.msk.f32.mxu1 %vm966_vm0, %v967_v1  ;;  %v756_v5 = vpack.c.bf16 %v54_v3, %v53_v2  ;;  %v138_v7 = vld [vmem:[#allocation5 + $0x80] sm:$0xff]  ;;  %v139_v8 = vld [vmem:[#allocation5 + $0x88] sm:$0xff]  ;;  %v140_v9 = vld [vmem:[#allocation5 + $0x90] sm:$0xff]  ;;  %v759_v11 = vpack.c.bf16 %v56_v6, %v55_v4  ;;  %s515_s21 = sshll.u32 %s968_s2, 4  ;;  %s516_s21 = int_to_ptr.vmem [resolvable:$true] %s515_s21 }
  0x39   :  { %v141_v10 = vld [vmem:[#allocation5 + $0x98] sm:$0xff]  ;;  %v762_v12 = vpack.c.bf16 %v139_v8, %v138_v7  ;;  %v142_v14 = vld [vmem:[#allocation5 + $0xa0] sm:$0xff]  ;;  %v143_v15 = vld [vmem:[#allocation5 + $0xa8] sm:$0xff]  ;;  %s932_s22 = scalar_lea.vmem %s516_s21, 128  ;;  %p937_p11 = scmp.lt.s32.totalorder %s516_s21, %s516_s21 }
  0x3a   :  { %757 = vmatpush3.bf16.msra.mxu0 %v756_v5  ;;  %v765_v13 = vpack.c.bf16 %v141_v10, %v140_v9  ;;  %v52_v16 = vld [vmem:[#allocation2] sm:$0xff]  ;;  %v768_v17 = vpack.c.bf16 %v143_v15, %v142_v14  ;;  %v144_v18 = vld [vmem:[#allocation5 + $0xb0] sm:$0xff]  ;;  %v146_v21 = vld [vmem:[#allocation5 + $0xc0] sm:$0xff]  ;;  %p933_p10 = scmp.ne.s32.totalorder %s516_s21, %s932_s22  ;;  %p938_p12 = scmp.lt.s32.totalorder %s932_s22, %s932_s22 }
  0x3b   :  { %758 = vmatprep.subr.bf16.mxu0 %v965_v0  ;;  %763 = vmatpush3.bf16.msra.mxu1 %v762_v12  ;;  %v145_v19 = vld [vmem:[#allocation5 + $0xb8] sm:$0xff]  ;;  %v147_v22 = vld [vmem:[#allocation5 + $0xc8] sm:$0xff]  ;;  %v148_v24 = vld [vmem:[#allocation5 + $0xd0] sm:$0xff] }
  0x3c   :  { %764 = vmatprep.subr.bf16.mxu1 %v965_v0  ;;  %v771_v20 = vpack.c.bf16 %v145_v19, %v144_v18  ;;  %v774_v23 = vpack.c.bf16 %v147_v22, %v146_v21  ;;  %v149_v25 = vld [vmem:[#allocation5 + $0xd8] sm:$0xff]  ;;  %v150_v27 = vld [vmem:[#allocation5 + $0xe0] sm:$0xff]  ;;  %v151_v28 = vld [vmem:[#allocation5 + $0xe8] sm:$0xff]  ;;  %p939_p13 = por %p938_p12, %p937_p11 }
  0x3d   :  { %v777_v26 = vpack.c.bf16 %v149_v25, %v148_v24  ;;  %v780_v29 = vpack.c.bf16 %v151_v28, %v150_v27  ;;  %v152_v30 = vld [vmem:[#allocation5 + $0xf0] sm:$0xff]  ;;  %v153_v31 = vld [vmem:[#allocation5 + $0xf8] sm:$0xff]  ;;  %v231_v33 = vld [vmem:[#allocation5 + $0x100] sm:$0xff] }
  0x3e   :  { %760 = vmatpush3.bf16.msra.mxu0 %v759_v11  ;;  %v783_v32 = vpack.c.bf16 %v153_v31, %v152_v30  ;;  %v232_v34 = vld [vmem:[#allocation5 + $0x108] sm:$0xff]  ;;  %v233_v35 = vld [vmem:[#allocation5 + $0x110] sm:$0xff]  ;;  %v234_v37 = vld [vmem:[#allocation5 + $0x118] sm:$0xff]  ;;  %p940_p0 = pnand %p939_p13, %p933_p10 }
  0x3f   :  { %785 = vmatprep.subr.bf16.mxu0 %v965_v0  ;;  %766 = vmatpush3.bf16.msra.mxu1 %v765_v13  ;;  %v786_v36 = vpack.c.bf16 %v232_v34, %v231_v33  ;;  %v789_v38 = vpack.c.bf16 %v234_v37, %v233_v35  ;;  %v235_v39 = vld [vmem:[#allocation5 + $0x120] sm:$0xff]  ;;  %v236_v40 = vld [vmem:[#allocation5 + $0x128] sm:$0xff]  ;;  %v237_v42 = vld [vmem:[#allocation5 + $0x130] sm:$0xff] }
  0x40   :  { %767 = vmatprep.subr.bf16.mxu1 %v965_v0  ;;  %v792_v41 = vpack.c.bf16 %v236_v40, %v235_v39  ;;  %v238_v43 = vld [vmem:[#allocation5 + $0x138] sm:$0xff]  ;;  %v239_v45 = vld [vmem:[#allocation5 + $0x140] sm:$0xff]  ;;  %v240_v46 = vld [vmem:[#allocation5 + $0x148] sm:$0xff] }
  0x41   :  { %613 = vmatmul.mubr.msk.f32.vlgmr.msra.gmra.mrb[0].mxu0 %vm62_vm1, %v52_v16  ;;  %v795_v44 = vpack.c.bf16 %v238_v43, %v237_v42  ;;  %v798_v47 = vpack.c.bf16 %v240_v46, %v239_v45  ;;  %v241_v48 = vld [vmem:[#allocation5 + $0x150] sm:$0xff]  ;;  %v242_v49 = vld [vmem:[#allocation5 + $0x158] sm:$0xff]  ;;  %v243_v51 = vld [vmem:[#allocation5 + $0x160] sm:$0xff] }
  0x42   :  { %682 = vmatprep.mubr.msk.f32.mxu0 %vm966_vm0, %v967_v1  ;;  %787 = vmatpush3.bf16.msra.mxu0 %v786_v36  ;;  %v801_v50 = vpack.c.bf16 %v242_v49, %v241_v48  ;;  %v244_v52 = vld [vmem:[#allocation5 + $0x168] sm:$0xff]  ;;  %v525_v54 = vld [vmem:[#allocation7] ss:$0 sm:$0xff]  ;;  %v245_v59 = vld [vmem:[#allocation5 + $0x170] sm:$0xff] }
  0x43   :  { %769 = vmatpush3.bf16.msra.mxu1 %v768_v17  ;;  %788 = vmatprep.subr.bf16.mxu0 %v965_v0  ;;  %v804_v53 = vpack.c.bf16 %v244_v52, %v243_v51  ;;  %v246_v60 = vld [vmem:[#allocation5 + $0x178] sm:$0xff]  ;;  %v324_v62 = vld [vmem:[#allocation5 + $0x180] sm:$0xff]  ;;  %v325_v63 = vld [vmem:[#allocation5 + $0x188] sm:$0xff] }
  0x44   :  { %770 = vmatprep.subr.bf16.mxu1 %v965_v0  ;;  %v807_v61 = vpack.c.bf16 %v246_v60, %v245_v59  ;;  %v326_v2 = vld [vmem:[#allocation5 + $0x190] sm:$0xff]  ;;  %v810_v3 = vpack.c.bf16 %v325_v63, %v324_v62  ;;  %v327_v4 = vld [vmem:[#allocation5 + $0x198] sm:$0xff]  ;;  %v328_v6 = vld [vmem:[#allocation5 + $0x1a0] sm:$0xff] }
  0x45   :  { %v813_v5 = vpack.c.bf16 %v327_v4, %v326_v2  ;;  %v329_v7 = vld [vmem:[#allocation5 + $0x1a8] sm:$0xff]  ;;  %v330_v9 = vld [vmem:[#allocation5 + $0x1b0] sm:$0xff]  ;;  %v331_v10 = vld [vmem:[#allocation5 + $0x1b8] sm:$0xff] }
  0x46   :  { %790 = vmatpush3.bf16.msra.mxu0 %v789_v38  ;;  %v816_v8 = vpack.c.bf16 %v329_v7, %v328_v6  ;;  %v819_v11 = vpack.c.bf16 %v331_v10, %v330_v9  ;;  %v332_v12 = vld [vmem:[#allocation5 + $0x1c0] sm:$0xff]  ;;  %v333_v13 = vld [vmem:[#allocation5 + $0x1c8] sm:$0xff]  ;;  %v334_v15 = vld [vmem:[#allocation5 + $0x1d0] sm:$0xff] }
  0x47   :  { %772 = vmatpush3.bf16.msra.mxu1 %v771_v20  ;;  %791 = vmatprep.subr.bf16.mxu0 %v965_v0  ;;  %v822_v14 = vpack.c.bf16 %v333_v13, %v332_v12  ;;  %v335_v16 = vld [vmem:[#allocation5 + $0x1d8] sm:$0xff]  ;;  %v336_v18 = vld [vmem:[#allocation5 + $0x1e0] sm:$0xff]  ;;  %v337_v19 = vld [vmem:[#allocation5 + $0x1e8] sm:$0xff] }
  0x48   :  { %773 = vmatprep.subr.bf16.mxu1 %v965_v0  ;;  %v825_v17 = vpack.c.bf16 %v335_v16, %v334_v15  ;;  %v828_v20 = vpack.c.bf16 %v337_v19, %v336_v18  ;;  %v527_v21 = vld [vmem:[#allocation7 + $0x1] ss:$0 sm:$0xff]  ;;  %v339_v27 = vld [vmem:[#allocation5 + $0x1f8] sm:$0xff]  ;;  %v418_v30 = vld [vmem:[#allocation5 + $0x208] sm:$0xff] }
  0x49   :  { %v419_v31 = vld [vmem:[#allocation5 + $0x210] sm:$0xff]  ;;  %v420_v33 = vld [vmem:[#allocation5 + $0x218] sm:$0xff]  ;;  %v421_v35 = vld [vmem:[#allocation5 + $0x220] sm:$0xff] }
  0x4a   :  { %793 = vmatpush3.bf16.msra.mxu0 %v792_v41  ;;  %v837_v34 = vpack.c.bf16 %v420_v33, %v419_v31  ;;  %v422_v36 = vld [vmem:[#allocation5 + $0x228] sm:$0xff]  ;;  %v424_v38 = vld [vmem:[#allocation5 + $0x238] sm:$0xff]  ;;  %v425_v40 = vld [vmem:[#allocation5 + $0x240] sm:$0xff] }
  0x4b   :  { %775 = vmatpush3.bf16.msra.mxu1 %v774_v23  ;;  %794 = vmatprep.subr.bf16.mxu0 %v965_v0  ;;  %v840_v37 = vpack.c.bf16 %v422_v36, %v421_v35  ;;  %v426_v41 = vld [vmem:[#allocation5 + $0x248] sm:$0xff]  ;;  %v427_v43 = vld [vmem:[#allocation5 + $0x250] sm:$0xff]  ;;  %v429_v46 = vld [vmem:[#allocation5 + $0x260] sm:$0xff] }
  0x4c   :  { %776 = vmatprep.subr.bf16.mxu1 %v965_v0  ;;  %v846_v42 = vpack.c.bf16 %v426_v41, %v425_v40  ;;  %v528_v49 = vld [vmem:[#allocation7 + $0x2] ss:$0 sm:$0xff]  ;;  %v530_v62 = vld [vmem:[#allocation7 + $0x4] ss:$0 sm:$0xff] }
  0x4e   :  { %796 = vmatpush3.bf16.msra.mxu0 %v795_v44  ;;  %v428_v44 = vld [vmem:[#allocation5 + $0x258] sm:$0xff] }
  0x4f   :  { %778 = vmatpush3.bf16.msra.mxu1 %v777_v26  ;;  %797 = vmatprep.subr.bf16.mxu0 %v965_v0  ;;  %v338_v26 = vld [vmem:[#allocation5 + $0x1f0] sm:$0xff]  ;;  %v849_v45 = vpack.c.bf16 %v428_v44, %v427_v43 }
  0x50   :  { %779 = vmatprep.subr.bf16.mxu1 %v965_v0  ;;  %v831_v28 = vpack.c.bf16 %v339_v27, %v338_v26 }
  0x52   :  { %799 = vmatpush3.bf16.msra.mxu0 %v798_v47  ;;  %v430_v47 = vld [vmem:[#allocation5 + $0x268] sm:$0xff] }
  0x53   :  { %781 = vmatpush3.bf16.msra.mxu1 %v780_v29  ;;  %800 = vmatprep.subr.bf16.mxu0 %v965_v0  ;;  %v417_v29 = vld [vmem:[#allocation5 + $0x200] sm:$0xff]  ;;  %v852_v48 = vpack.c.bf16 %v430_v47, %v429_v46 }
  0x54   :  { %782 = vmatprep.subr.bf16.mxu1 %v965_v0 }
  0x56   :  { %802 = vmatpush3.bf16.msra.mxu0 %v801_v50 }
  0x57   :  { %784 = vmatpush3.bf16.msra.mxu1 %v783_v32  ;;  %803 = vmatprep.subr.bf16.mxu0 %v965_v0  ;;  %v834_v32 = vpack.c.bf16 %v418_v30, %v417_v29 }
  0x58   :  { %809 = vmatprep.subr.bf16.mxu1 %v965_v0 }
  0x5a   :  { %805 = vmatpush3.bf16.msra.mxu0 %v804_v53 }
  0x5b   :  { %806 = vmatprep.subr.bf16.mxu0 %v965_v0 }
  0x5e   :  { %808 = vmatpush3.bf16.msra.mxu0 %v807_v61 }
  0x5f   :  { %833 = vmatprep.subr.bf16.mxu0 %v965_v0 }
 0x114   :  { %v132_v55 = vpop.f32.mrb[0].mxu0 }
 0x115   :  { %v133_v56 = vadd.f32 %v525_v54, %v132_v55  ;;  %v614_v57 = vpop.f32.mrb[1].mxu0  ;;  %v431_v54 = vld [vmem:[#allocation5 + $0x270] sm:$0xff]  ;;  %v432_v55 = vld [vmem:[#allocation5 + $0x278] sm:$0xff] }
 0x116   :  { %v529_v57 = vld [vmem:[#allocation7 + $0x3] ss:$0 sm:$0xff] }
 0x117   :  { %v136_v58 = vmax.f32 %v133_v56, 0.0  ;;  %v855_v56 = vpack.c.bf16 %v432_v55, %v431_v54 }
 0x119   :  { %648 = vmatmul.mubr.f32.vlgmr.msra.gmra.mrb[0].mxu1 %v136_v58 }
 0x11a   :  { %717 = vmatprep.mubr.msk.f32.mxu1 %vm966_vm0, %v967_v1  ;;  %811 = vmatpush3.bf16.msra.mxu1 %v810_v3 }
 0x11b   :  { %812 = vmatprep.subr.bf16.mxu1 %v965_v0 }
 0x11e   :  { %814 = vmatpush3.bf16.msra.mxu1 %v813_v5 }
 0x11f   :  { %815 = vmatprep.subr.bf16.mxu1 %v965_v0 }
 0x122   :  { %817 = vmatpush3.bf16.msra.mxu1 %v816_v8 }
 0x123   :  { %818 = vmatprep.subr.bf16.mxu1 %v965_v0 }
 0x126   :  { %820 = vmatpush3.bf16.msra.mxu1 %v819_v11 }
 0x127   :  { %821 = vmatprep.subr.bf16.mxu1 %v965_v0 }
 0x12a   :  { %823 = vmatpush3.bf16.msra.mxu1 %v822_v14 }
 0x12b   :  { %824 = vmatprep.subr.bf16.mxu1 %v965_v0 }
 0x12e   :  { %826 = vmatpush3.bf16.msra.mxu1 %v825_v17 }
 0x12f   :  { %827 = vmatprep.subr.bf16.mxu1 %v965_v0 }
 0x132   :  { %829 = vmatpush3.bf16.msra.mxu1 %v828_v20 }
 0x133   :  { %830 = vmatprep.subr.bf16.mxu1 %v965_v0 }
 0x136   :  { %832 = vmatpush3.bf16.msra.mxu1 %v831_v28 }
 0x1ec   :  { %v225_v22 = vpop.f32.mrb[0].mxu1 }
 0x1ed   :  { %v226_v23 = vadd.f32 %v527_v21, %v225_v22  ;;  %v649_v24 = vpop.f32.mrb[1].mxu1 }
 0x1ef   :  { %v229_v25 = vmax.f32 %v226_v23, 0.0 }
 0x1f1   :  { %683 = vmatmul.mubr.f32.vlgmr.msra.gmra.mrb[2].mxu0 %v229_v25 }
 0x1f2   :  { %752 = vmatprep.mubr.msk.f32.mxu0 %vm966_vm0, %v967_v1  ;;  %835 = vmatpush3.bf16.msra.mxu0 %v834_v32  ;;  %v423_v1 = vld [vmem:[#allocation5 + $0x230] sm:$0xff] }
 0x1f3   :  { %836 = vmatprep.subr.bf16.mxu0 %v965_v0  ;;  %v843_v39 = vpack.c.bf16 %v424_v38, %v423_v1 }
 0x1f6   :  { %838 = vmatpush3.bf16.msra.mxu0 %v837_v34 }
 0x1f7   :  { %839 = vmatprep.subr.bf16.mxu0 %v965_v0 }
 0x1fa   :  { %841 = vmatpush3.bf16.msra.mxu0 %v840_v37 }
 0x1fb   :  { %842 = vmatprep.subr.bf16.mxu0 %v965_v0 }
 0x1fe   :  { %844 = vmatpush3.bf16.msra.mxu0 %v843_v39 }
 0x1ff   :  { %845 = vmatprep.subr.bf16.mxu0 %v965_v0 }
 0x202   :  { %847 = vmatpush3.bf16.msra.mxu0 %v846_v42 }
 0x203   :  { %848 = vmatprep.subr.bf16.mxu0 %v965_v0 }
 0x206   :  { %850 = vmatpush3.bf16.msra.mxu0 %v849_v45 }
 0x207   :  { %851 = vmatprep.subr.bf16.mxu0 %v965_v0 }
 0x20a   :  { %853 = vmatpush3.bf16.msra.mxu0 %v852_v48 }
 0x20b   :  { %854 = vmatprep.subr.bf16.mxu0 %v965_v0 }
 0x20e   :  { %856 = vmatpush3.bf16.msra.mxu0 %v855_v56 }
 0x2c4   :  { %v318_v50 = vpop.f32.mrb[2].mxu0 }
 0x2c5   :  { %v319_v51 = vadd.f32 %v528_v49, %v318_v50  ;;  %v684_v52 = vpop.f32.mrb[3].mxu0 }
 0x2c7   :  { %v322_v53 = vmax.f32 %v319_v51, 0.0 }
 0x2c9   :  { %718 = vmatmul.mubr.f32.vlgmr.msra.gmra.mrb[2].mxu1 %v322_v53 }
 0x39c   :  { %v411_v58 = vpop.f32.mrb[2].mxu1 }
 0x39d   :  { %v412_v59 = vadd.f32 %v529_v57, %v411_v58  ;;  %v719_v60 = vpop.f32.mrb[3].mxu1 }
 0x39f   :  { %v415_v61 = vmax.f32 %v412_v59, 0.0 }
 0x3a1   :  { %753 = vmatmul.mubr.f32.vlgmr.msra.gmra.mrb[4].mxu0 %v415_v61 }
 0x474   :  { %v504_v0 = vpop.f32.mrb[4].mxu0 }
 0x475   :  { %v505_v63 = vadd.f32 %v530_v62, %v504_v0  ;;  %v754_v2 = vpop.f32.mrb[5].mxu0 }
 0x477   :  { %508 = vst [vmem:[#allocation8] sm:$0xff] %v505_v63 }
 0x478   :  { %943 = shalt.err (!%p940_p0)
}
 0x479   :  { %s944_s25 = scalar_lea.hbm %s1084_s3, 128 }
 0x47a   :  { %p945_p1 = scmp.ne.s32.totalorder %s1084_s3, %s944_s25  ;;  %p948_p2 = scmp.lt.u32.totalorder %s944_s25, %s1084_s3 }
 0x47c   :  { %p950_p3 = pnand %p948_p2, %p945_p1 }
 0x47e   :  { %953 = shalt.err (!%p950_p3)
}
 0x47f   :  { %518 = dma.vmem_to_hbm [thread:$0]  %s516_s21, 128, %s1084_s3, [#allocation4]  }
 0x480   :  { %958 = dma.done.wait [#allocation4], 128  }
 0x481   :  { %959 = vsyncadd [#allocation4], 4294967168 }
 0x482   :  { %522 = vsyncpa [#allocation3], 1 }
 0x483   :  { %523 = vsyncpa [#allocation6], 1 }
 0x484   :  { %524 = vsyncpa [#allocation4], 1 }

</bundles_post_ra>
